<compile_context>
chip_gen: v6e
topology: v6e:2x2x1
jax: 0.10.0
libtpu: 0.0.40
codegen_flags: <defaults>
</compile_context>

<pallas_src>
import jax
import jax.numpy as jnp
from jax.experimental import pallas as pl
from jax.experimental.pallas import tpu as pltpu


H_PAD = 128  # lane-dense padding for both hidden layers


def _round_up(x, m):
    return ((x + m - 1) // m) * m


def dbn_kernel(cats_ref, sel_ref, cmap_ref, w0_ref, c0_ref, w1_ref, c1_ref,
               o_ref):
    """Fused two-layer DBN forward for one batch tile.

    cats_ref: (TB, V0)   int8   -- category index per visible unit
    sel_ref:  (V0, K)    bf16   -- constant selection matrix (lane expansion)
    cmap_ref: (1, K)     f32    -- per-column category id (-1 on padded cols)
    w0_ref:   (K, H0p)   bf16   -- RBM_cb weights, flattened (c*V0+v) & padded
    c0_ref:   (1, H0p)   f32
    w1_ref:   (H0p, H1p) bf16   -- RBM_bb weights, transposed & padded
    c1_ref:   (1, H1p)   f32
    o_ref:    (TB, H1p)  bf16
    """
    # ---- Layer 1 (RBM_cb): build the flat one-hot on the fly.
    # cats_exp[b, k] = cats[b, v(k)]  via a tiny MXU matmul (exact small ints).
    cats_f = cats_ref[...].astype(jnp.float32)               # (TB, V0)
    cats_exp = jnp.dot(cats_f.astype(jnp.bfloat16), sel_ref[...],
                       preferred_element_type=jnp.float32)    # (TB, K)
    onehot = (cats_exp == cmap_ref[...]).astype(jnp.bfloat16)  # (TB, K) 0/1
    z1 = jnp.dot(onehot, w0_ref[...],
                 preferred_element_type=jnp.float32) + c0_ref[...]
    h1 = jax.nn.sigmoid(z1)                                    # f32 (TB, H0p)

    # ---- Layer 2 (RBM_bb): h2 = sigmoid(h1 @ W1^T + c1)
    # Padded h1 columns are sigmoid(0)=0.5 but hit zero rows of w1 -> no effect.
    z2 = jnp.dot(h1.astype(jnp.bfloat16), w1_ref[...],
                 preferred_element_type=jnp.float32) + c1_ref[...]
    o_ref[...] = jax.nn.sigmoid(z2).astype(o_ref.dtype)        # bf16 store


def _prep_params(W0, c0, W1, c1):
    """Flatten/transpose to (in, out), pad to lane-dense shapes, cast to bf16.

    Padded rows/columns are exactly zero (and cmap is -1 on padded columns),
    which is what makes the padded-lane trick correct.
    """
    H0, C, V0 = W0.shape
    H1 = W1.shape[0]
    K = _round_up(C * V0, 128)                                   # 250 -> 256

    # Layer-1 weights flattened with k = c*V0 + v  -> (K, H_PAD) bf16.
    w0 = jnp.transpose(W0, (1, 2, 0)).reshape(C * V0, H0)
    w0 = jnp.pad(w0, ((0, K - C * V0), (0, H_PAD - H0))).astype(jnp.bfloat16)
    c0p = jnp.pad(c0, (0, H_PAD - H0)).astype(jnp.float32).reshape(1, H_PAD)

    # Selection matrix: sel[v, k] = [k < C*V0 and k % V0 == v]  (bf16, ~25 KiB).
    k_idx = jnp.arange(K)
    v_of_k = jnp.where(k_idx < C * V0, k_idx % V0, -1)
    sel = (jnp.arange(V0)[:, None] == v_of_k[None, :]).astype(jnp.bfloat16)
    # Per-column category id; -1 on padded columns so they never match.
    cmap = jnp.where(k_idx < C * V0, k_idx // V0, -1)
    cmap = cmap.astype(jnp.float32).reshape(1, K)

    # Layer-2 weights (in, out); padded rows/cols stay zero.
    w1 = jnp.pad(W1.T, ((0, H_PAD - H0), (0, H_PAD - H1))).astype(jnp.bfloat16)
    c1p = jnp.pad(c1, (0, H_PAD - H1)).astype(jnp.float32).reshape(1, H_PAD)
    return sel, cmap, w0, c0p, w1, c1p, H1


def dbn_forward(cats, W0, c0, W1, c1, *, batch_tile=4096, single_call_max=1024,
                return_padded=False):
    """DBN.forward. cats: (B, V0) integer category indices -> (B, H1) bf16.

    Output probabilities are bf16 (f32 accumulation inside the kernel). Pass
    return_padded=True to get the raw lane-dense (B, 128) slab and skip the
    wrapper slice entirely.
    """
    sel, cmap, w0, c0p, w1, c1p, H1 = _prep_params(W0, c0, W1, c1)
    cats = cats.astype(jnp.int8)          # categories fit in int8; 4x less HBM
    B, V0 = cats.shape

    if B <= single_call_max:
        # Tiny problem: single invocation, everything resident in VMEM, no grid
        # scaffolding / double-buffer overhead.
        vmem = pl.BlockSpec(memory_space=pltpu.MemorySpace.VMEM)
        out = pl.pallas_call(
            dbn_kernel,
            out_shape=jax.ShapeDtypeStruct((B, H_PAD), jnp.bfloat16),
            in_specs=[vmem] * 7,
            out_specs=vmem,
        )(cats, sel, cmap, w0, c0p, w1, c1p)
    else:
        # Batched/serving path: tile only the batch axis; weights/biases stay
        # resident in VMEM via constant index_maps. Ensure >= 2 grid steps so
        # the parallel batch axis can spread over v7x's two TensorCores.
        # (pltpu.CORE_PARALLEL / pl.core_map would make the cross-core split
        #  explicit on v7x; plain "parallel" is used here for portability.)
        tb = min(batch_tile, max(128, _round_up((B + 1) // 2, 128)))
        Bp = _round_up(B, tb)
        if Bp != B:
            cats = jnp.pad(cats, ((0, Bp - B), (0, 0)))
        out = pl.pallas_call(
            dbn_kernel,
            out_shape=jax.ShapeDtypeStruct((Bp, H_PAD), jnp.bfloat16),
            grid=(Bp // tb,),
            in_specs=[
                pl.BlockSpec((tb, V0), lambda i: (i, 0)),      # cats (int8)
                pl.BlockSpec(sel.shape, lambda i: (0, 0)),     # resident consts
                pl.BlockSpec(cmap.shape, lambda i: (0, 0)),
                pl.BlockSpec(w0.shape, lambda i: (0, 0)),
                pl.BlockSpec(c0p.shape, lambda i: (0, 0)),
                pl.BlockSpec(w1.shape, lambda i: (0, 0)),
                pl.BlockSpec(c1p.shape, lambda i: (0, 0)),
            ],
            out_specs=pl.BlockSpec((tb, H_PAD), lambda i: (i, 0)),
            compiler_params=pltpu.CompilerParams(
                dimension_semantics=("parallel",)),
        )(cats, sel, cmap, w0, c0p, w1, c1p)

    if return_padded:
        return out
    # Single combined slice (one XLA op) instead of two sequential slices.
    return out[:B, :H1]


if __name__ == "__main__":
    # Module hyper-parameters (DBN.__init__ defaults)
    num_categories = 5
    num_visible = [50, 25]
    num_hidden = [25, 12]
    B = 2  # batch

    key = jax.random.PRNGKey(0)
    k_x, k_w0, k_c0, k_w1, k_c1, k_x2 = jax.random.split(key, 6)

    # Deterministic synthetic parameters (no checkpoint load).
    W0 = 0.01 * jax.random.normal(
        k_w0, (num_hidden[0], num_categories, num_visible[0]), jnp.float32)
    c0 = 0.01 * jax.random.normal(k_c0, (num_hidden[0],), jnp.float32)
    W1 = 0.01 * jax.random.normal(
        k_w1, (num_hidden[1], num_visible[1]), jnp.float32)
    c1 = 0.01 * jax.random.normal(k_c1, (num_hidden[1],), jnp.float32)

    # Input: category index per visible unit; the one-hot is built in-kernel.
    cats = jax.random.randint(k_x, (B, num_visible[0]), 0, num_categories)

    out = jax.block_until_ready(dbn_forward(cats, W0, c0, W1, c1))
    assert out.shape == (B, num_hidden[1])
    assert out.dtype == jnp.bfloat16

    # Reference in plain JAX (with the same bf16 weight/activation quantization;
    # output kept f32 -> compare with bf16-store tolerance).
    def ref_forward(cats_i):
        x = jax.nn.one_hot(cats_i, num_categories, axis=1, dtype=jnp.float32)
        x_flat = x.reshape(cats_i.shape[0], -1)                  # (B, C*V0)
        W0q = W0.reshape(num_hidden[0], -1).T                    # (C*V0, H0)
        W0q = W0q.astype(jnp.bfloat16).astype(jnp.float32)
        W1q = W1.T.astype(jnp.bfloat16).astype(jnp.float32)
        h1 = jax.nn.sigmoid(x_flat @ W0q + c0[None, :])
        h1 = h1.astype(jnp.bfloat16).astype(jnp.float32)
        return jax.nn.sigmoid(h1 @ W1q + c1[None, :])

    ref = ref_forward(cats)
    err = float(jnp.max(jnp.abs(out.astype(jnp.float32) - ref)))
    assert err < 1e-2, err

    # Also exercise the batch-tiled path (grid over batch, weights resident).
    B2 = 300
    cats2 = jax.random.randint(k_x2, (B2, num_visible[0]), 0, num_categories)
    out2 = jax.block_until_ready(
        dbn_forward(cats2, W0, c0, W1, c1, batch_tile=128, single_call_max=64))
    ref2 = ref_forward(cats2)
    assert out2.shape == (B2, num_hidden[1])
    err2 = float(jnp.max(jnp.abs(out2.astype(jnp.float32) - ref2)))
    assert err2 < 1e-2, err2

    print("KERNEL_OK")
</pallas_src>

<mosaic_0001>
module attributes {stable_mosaic.version = 11 : i64} {
  func.func @dbn_kernel(%arg0: memref<2x50xi8, #tpu.memory_space<vmem>>, %arg1: memref<50x256xbf16, #tpu.memory_space<vmem>>, %arg2: memref<1x256xf32, #tpu.memory_space<vmem>>, %arg3: memref<256x128xbf16, #tpu.memory_space<vmem>>, %arg4: memref<1x128xf32, #tpu.memory_space<vmem>>, %arg5: memref<128x128xbf16, #tpu.memory_space<vmem>>, %arg6: memref<1x128xf32, #tpu.memory_space<vmem>>, %arg7: memref<2x128xbf16, #tpu.memory_space<vmem>>) attributes {dimension_semantics = [], scalar_prefetch = 0 : i64, scratch_operands = 0 : i64, tpu.core_type = #tpu.core_type<tc>} {
    %c0 = arith.constant 0 : index
    %c0_0 = arith.constant 0 : index
    %0 = vector.load %arg0[%c0, %c0_0] : memref<2x50xi8, #tpu.memory_space<vmem>>, vector<2x50xi8>
    %1 = arith.sitofp %0 : vector<2x50xi8> to vector<2x50xf32>
    %2 = arith.truncf %1 : vector<2x50xf32> to vector<2x50xbf16>
    %c0_1 = arith.constant 0 : index
    %c0_2 = arith.constant 0 : index
    %3 = vector.load %arg1[%c0_1, %c0_2] : memref<50x256xbf16, #tpu.memory_space<vmem>>, vector<50x256xbf16>
    %cst = arith.constant dense<0.000000e+00> : vector<2x256xf32>
    %4 = tpu.matmul %2, %3, %cst {dimension_numbers = #tpu.dot_dimension_numbers<[1], [0], [0], [1], [0, 0, 1, 1], [], []>} : vector<2x50xbf16>, vector<50x256xbf16>, vector<2x256xf32> -> vector<2x256xf32>
    %c0_3 = arith.constant 0 : index
    %c0_4 = arith.constant 0 : index
    %5 = vector.load %arg2[%c0_3, %c0_4] : memref<1x256xf32, #tpu.memory_space<vmem>>, vector<1x256xf32>
    %6 = vector.broadcast %5 : vector<1x256xf32> to vector<2x256xf32>
    %7 = arith.cmpf oeq, %4, %6 : vector<2x256xf32>
    %8 = arith.extui %7 : vector<2x256xi1> to vector<2x256xi32>
    %9 = arith.sitofp %8 : vector<2x256xi32> to vector<2x256xf32>
    %10 = arith.truncf %9 : vector<2x256xf32> to vector<2x256xbf16>
    %c0_5 = arith.constant 0 : index
    %c0_6 = arith.constant 0 : index
    %11 = vector.load %arg3[%c0_5, %c0_6] : memref<256x128xbf16, #tpu.memory_space<vmem>>, vector<256x128xbf16>
    %cst_7 = arith.constant dense<0.000000e+00> : vector<2x128xf32>
    %12 = tpu.matmul %10, %11, %cst_7 {dimension_numbers = #tpu.dot_dimension_numbers<[1], [0], [0], [1], [0, 0, 1, 1], [], []>} : vector<2x256xbf16>, vector<256x128xbf16>, vector<2x128xf32> -> vector<2x128xf32>
    %c0_8 = arith.constant 0 : index
    %c0_9 = arith.constant 0 : index
    %13 = vector.load %arg4[%c0_8, %c0_9] : memref<1x128xf32, #tpu.memory_space<vmem>>, vector<1x128xf32>
    %14 = vector.broadcast %13 : vector<1x128xf32> to vector<2x128xf32>
    %15 = arith.addf %12, %14 : vector<2x128xf32>
    %16 = arith.negf %15 : vector<2x128xf32>
    %17 = math.exp %16 : vector<2x128xf32>
    %cst_10 = arith.constant 1.000000e+00 : f32
    %18 = vector.broadcast %cst_10 : f32 to vector<2x128xf32>
    %19 = arith.addf %18, %17 : vector<2x128xf32>
    %20 = arith.divf %18, %19 : vector<2x128xf32>
    %21 = arith.truncf %20 : vector<2x128xf32> to vector<2x128xbf16>
    %c0_11 = arith.constant 0 : index
    %c0_12 = arith.constant 0 : index
    %22 = vector.load %arg5[%c0_11, %c0_12] : memref<128x128xbf16, #tpu.memory_space<vmem>>, vector<128x128xbf16>
    %cst_13 = arith.constant dense<0.000000e+00> : vector<2x128xf32>
    %23 = tpu.matmul %21, %22, %cst_13 {dimension_numbers = #tpu.dot_dimension_numbers<[1], [0], [0], [1], [0, 0, 1, 1], [], []>} : vector<2x128xbf16>, vector<128x128xbf16>, vector<2x128xf32> -> vector<2x128xf32>
    %c0_14 = arith.constant 0 : index
    %c0_15 = arith.constant 0 : index
    %24 = vector.load %arg6[%c0_14, %c0_15] : memref<1x128xf32, #tpu.memory_space<vmem>>, vector<1x128xf32>
    %25 = vector.broadcast %24 : vector<1x128xf32> to vector<2x128xf32>
    %26 = arith.addf %23, %25 : vector<2x128xf32>
    %27 = arith.negf %26 : vector<2x128xf32>
    %28 = math.exp %27 : vector<2x128xf32>
    %cst_16 = arith.constant 1.000000e+00 : f32
    %29 = vector.broadcast %cst_16 : f32 to vector<2x128xf32>
    %30 = arith.addf %29, %28 : vector<2x128xf32>
    %31 = arith.divf %29, %30 : vector<2x128xf32>
    %32 = arith.truncf %31 : vector<2x128xf32> to vector<2x128xbf16>
    %c0_17 = arith.constant 0 : index
    %c0_18 = arith.constant 0 : index
    %33 = vector.load %arg7[%c0_17, %c0_18] : memref<2x128xbf16, #tpu.memory_space<vmem>>, vector<2x128xbf16>
    tpu.vector_store %arg7[%c0_17, %c0_18], %32 {strides = array<i32>} : memref<2x128xbf16, #tpu.memory_space<vmem>>, vector<2x128xbf16>,
    return
  }
}

</mosaic_0001>

<bundles_post_ra>
// kernel: tpu_custom_call.1
= control target key start
LH: loop header
LB: loop body
LE: loop exit
PB: predicated region body
PF: predicated region fallthrough
CT: control target
= control target key end

     0   :  { %12 = vsyncpa [#allocation3], 0  ;;  %s851_s0 = inlined_call_operand.hbm [shape: s8[2,50], index: 0, kind: input, shape index: {}]   ;;  %s852_s1 = inlined_call_operand.hbm [shape: bf16[50,256], index: 1, kind: input, shape index: {}]   ;;  %s853_s2 = inlined_call_operand.vmem [shape: f32[1,256], index: 2, kind: input, shape index: {}]   ;;  %s854_s3 = inlined_call_operand.hbm [shape: bf16[256,128], index: 3, kind: input, shape index: {}]   ;;  %s855_s4 = inlined_call_operand.vmem [shape: f32[1,128], index: 4, kind: input, shape index: {}]   ;;  %s856_s5 = inlined_call_operand.hbm [shape: bf16[128,128], index: 5, kind: input, shape index: {}]   ;;  %s857_s6 = inlined_call_operand.vmem [shape: f32[1,128], index: 6, kind: input, shape index: {}]   ;;  %s858_s7 = inlined_call_operand.hbm [shape: bf16[2,128], index: 7, kind: output, shape index: {}]  }
   0x1   :  { %13 = vsyncpa [#allocation6], 0 }
   0x2   :  { %14 = vsyncpa [#allocation9], 0 }
   0x3   :  { %15 = vsyncpa [#allocation4], 0  ;;  %s774_s24 = smov [#allocation5]  }
   0x4   :  { %s31_s25 = sshll.u32 %s774_s24, 4  ;;  %s32_s25 = int_to_ptr.vmem [resolvable:$true] %s31_s25 }
   0x5   :  { %s674_s26 = scalar_lea.vmem %s32_s25, 896  ;;  %p679_p1 = scmp.lt.s32.totalorder %s32_s25, %s32_s25 }
   0x6   :  { %p675_p0 = scmp.ne.s32.totalorder %s32_s25, %s674_s26  ;;  %p680_p2 = scmp.lt.s32.totalorder %s674_s26, %s674_s26 }
   0x8   :  { %p681_p3 = por %p680_p2, %p679_p1 }
   0xa   :  { %p682_p4 = pnand %p681_p3, %p675_p0 }
   0xc   :  { %685 = shalt.err (!%p682_p4)
}
   0xd   :  { %s775_s27 = smov 128   ;;  %s776_s28 = smov 8  }
   0xe   :  { %37 = dma.hbm_to_vmem [thread:$0]  %s852_s1, 896, %s32_s25, [#allocation6], %s775_s27, %s775_s27, %s776_s28  }
   0xf   :  { %s777_s8 = smov [#allocation2]   ;;  %s778_s10 = smov [#allocation7]  }
  0x10   :  { %s22_s9 = sshll.u32 %s777_s8, 4  ;;  %s45_s11 = sshll.u32 %s778_s10, 4  ;;  %s23_s9 = int_to_ptr.vmem [resolvable:$true] %s22_s9  ;;  %s46_s11 = int_to_ptr.vmem [resolvable:$true] %s45_s11 }
  0x11   :  { %s694_s12 = scalar_lea.vmem %s23_s9, 16  ;;  %s698_s13 = scalar_lea.vmem %s23_s9, 32 }
  0x12   :  { %p695_p5 = scmp.ne.s32.totalorder %s23_s9, %s694_s12  ;;  %p699_p6 = scmp.lt.s32.totalorder %s23_s9, %s23_s9 }
  0x13   :  { %p700_p7 = scmp.lt.s32.totalorder %s698_s13, %s694_s12 }
  0x15   :  { %p701_p8 = por %p700_p7, %p699_p6 }
  0x17   :  { %p702_p9 = pnand %p701_p8, %p695_p5 }
  0x19   :  { %705 = shalt.err (!%p702_p9)
}
  0x1a   :  { %25 = dma.hbm_to_vmem [thread:$0]  %s851_s0, 16, %s23_s9, [#allocation3]  }
  0x1b   :  { %s714_s16 = scalar_lea.vmem %s46_s11, 2048  ;;  %p719_p11 = scmp.lt.s32.totalorder %s46_s11, %s46_s11 }
  0x1c   :  { %p715_p10 = scmp.ne.s32.totalorder %s46_s11, %s714_s16  ;;  %p720_p12 = scmp.lt.s32.totalorder %s714_s16, %s714_s16 }
  0x1e   :  { %p721_p13 = por %p720_p12, %p719_p11 }
  0x20   :  { %p722_p0 = pnand %p721_p13, %p715_p10 }
  0x22   :  { %725 = shalt.err (!%p722_p0)
}
  0x23   :  { %s779_s1 = smov 64   ;;  %s780_s17 = smov 4  }
  0x24   :  { %51 = dma.hbm_to_vmem [thread:$0]  %s854_s3, 2048, %s46_s11, [#allocation6], %s779_s1, %s779_s1, %s780_s17  }
  0x25   :  { %s781_s20 = smov [#allocation8]  }
  0x26   :  { %s59_s21 = sshll.u32 %s781_s20, 4  ;;  %s60_s21 = int_to_ptr.vmem [resolvable:$true] %s59_s21 }
  0x27   :  { %s734_s22 = scalar_lea.vmem %s60_s21, 1024  ;;  %p739_p2 = scmp.lt.s32.totalorder %s60_s21, %s60_s21 }
  0x28   :  { %p735_p1 = scmp.ne.s32.totalorder %s60_s21, %s734_s22  ;;  %p740_p3 = scmp.lt.s32.totalorder %s734_s22, %s734_s22 }
  0x2a   :  { %p741_p4 = por %p740_p3, %p739_p2 }
  0x2c   :  { %p742_p5 = pnand %p741_p4, %p735_p1 }
  0x2e   :  { %745 = shalt.err (!%p742_p5)
}
  0x2f   :  { %65 = dma.hbm_to_vmem [thread:$0]  %s856_s5, 1024, %s60_s21, [#allocation9], %s779_s1, %s779_s1, %s780_s17  }
  0x30   :  { %766 = dma.done.wait [#allocation3], 16  }
  0x31   :  { %767 = vsyncadd [#allocation3], 4294967280 }
  0x32   :  { %768 = dma.done.wait [#allocation6], 2944  }
  0x33   :  { %769 = vsyncadd [#allocation6], 4294964352 }
  0x34   :  { %770 = dma.done.wait [#allocation9], 1024  }
  0x35   :  { %771 = vsyncadd [#allocation9], 4294966272  ;;  %v782_v0 = vmov 0   ;;  %v89_v1 = vld [vmem:[#allocation5 + $0x30] sm:$0x11]  ;;  %vm129_vm0 = vcmask 1040384   ;;  %v179_v29 = vlaneseq }
  0x36   :  { %168 = vmatprep.mubr.bf16.mxu0 %v782_v0  ;;  %v522_v2 = vcombine.high %v89_v1, %v89_v1  ;;  %v521_v3 = vcombine.low %v89_v1, %v89_v1  ;;  %v625_v4 = vld [vmem:[#allocation5 + $0x24] ss:$8 sps:$4 sm:$0xff]   ;;  %v627_v6 = vld [vmem:[#allocation5 + $0x20] ss:$8 sps:$4 sm:$0xff]   ;;  %v628_v7 = vld [vmem:[#allocation5 + $0x14] ss:$8 sps:$4 sm:$0xff]  }
  0x37   :  { %v634_v8 = vld [vmem:[#allocation7 + $0x78] sm:$0xff]   ;;  %v631_v11 = vld [vmem:[#allocation5 + $0x4] ss:$8 sps:$4 sm:$0xff]   ;;  %v633_v15 = vld [vmem:[#allocation5] ss:$8 sps:$4 sm:$0xff]   ;;  %vm125_vm1 = vcmask 408576  }
  0x38   :  { %523 = vmatprep.subr.msk.bf16.mxu0 %vm129_vm0, %v522_v2  ;;  %v131_v5 = vsel %vm129_vm0, %v521_v3, 0  ;;  %v630_v9 = vld [vmem:[#allocation5 + $0x10] ss:$8 sps:$4 sm:$0xff]   ;;  %559 = vmatprep.subr.bf16.mxu1 %v634_v8  ;;  %v636_v12 = vld [vmem:[#allocation7 + $0x70] sm:$0xff]   ;;  %v638_v14 = vld [vmem:[#allocation7 + $0x68] sm:$0xff]   ;;  %v180_v30 = vshrl.u32 %v179_v29, 7 }
  0x39   :  { %145 = vmatpush1.bf16.msra.mxu0 %v131_v5  ;;  %v635_v10 = vld [vmem:[#allocation7 + $0x38] sm:$0xff]   ;;  %v637_v13 = vld [vmem:[#allocation7 + $0x30] sm:$0xff]   ;;  %v81_v16 = vld [vmem:[#allocation2] sm:$0x1]  ;;  %v783_v39 = vmov 1.0|1.0  }
  0x3a   :  { %146 = vmatprep.subr.bf16.mxu0 %v625_v4  ;;  %560 = vmatpush3.bf16.msra.mxu1 %v635_v10  ;;  %v639_v17 = vld [vmem:[#allocation7 + $0x28] sm:$0xff]   ;;  %v640_v18 = vld [vmem:[#allocation7 + $0x60] sm:$0xff]   ;;  %v82_v19 = vunpack.c.l.s8.bf16 %v81_v16  ;;  %v642_v21 = vld [vmem:[#allocation7 + $0x58] sm:$0xff]   ;;  %v181_v31 = vsub.s32 0, %v180_v30  ;;  %v185_v33 = vsub.s32 1, %v180_v30  ;;  %v784_v42 = vmov 0.0  }
  0x3b   :  { %561 = vmatprep.subr.bf16.mxu1 %v636_v12  ;;  %v641_v20 = vld [vmem:[#allocation7 + $0x20] sm:$0xff]   ;;  %v643_v22 = vld [vmem:[#allocation7 + $0x18] sm:$0xff]   ;;  %v644_v23 = vld [vmem:[#allocation7 + $0x50] sm:$0xff]   ;;  %vm785_vm6 = vmmov 0  }
  0x3c   :  { %v645_v24 = vld [vmem:[#allocation7 + $0x10] sm:$0xff]   ;;  %v646_v25 = vld [vmem:[#allocation7 + $0x48] sm:$0xff]   ;;  %v648_v27 = vld [vmem:[#allocation7 + $0x40] sm:$0xff]  }
  0x3d   :  { %147 = vmatpush1.bf16.msra.mxu0 %v627_v6  ;;  %v647_v26 = vld [vmem:[#allocation7 + $0x8] sm:$0xff]   ;;  %v649_v28 = vld [vmem:[#allocation7] sm:$0xff]   ;;  %v650_v41 = vld [vmem:[#allocation8 + $0x38] sm:$0xff]  }
  0x3e   :  { %148 = vmatprep.subr.bf16.mxu0 %v628_v7  ;;  %562 = vmatpush3.bf16.msra.mxu1 %v637_v13  ;;  %v177_v32 = vld [vmem:[%s853_s2] sm:$0x3]  ;;  %v651_v43 = vld [vmem:[#allocation8 + $0x30] sm:$0xff]   ;;  %v652_v44 = vld [vmem:[#allocation8 + $0x28] sm:$0xff]  }
  0x3f   :  { %563 = vmatprep.subr.bf16.mxu1 %v638_v14  ;;  %v182_v34 = vrot.slane %v177_v32, %v181_v31  ;;  %v186_v35 = vrot.slane %v177_v32, %v185_v33  ;;  %v653_v45 = vld [vmem:[#allocation8 + $0x20] sm:$0xff]   ;;  %v654_v46 = vld [vmem:[#allocation8 + $0x18] sm:$0xff]   ;;  %v655_v47 = vld [vmem:[#allocation8 + $0x10] sm:$0xff]  }
  0x40   :  { %v656_v48 = vld [vmem:[#allocation8 + $0x8] sm:$0xff]   ;;  %v657_v49 = vld [vmem:[#allocation8] sm:$0xff]  }
  0x41   :  { %149 = vmatpush1.bf16.msra.mxu0 %v630_v9  ;;  %v527_v51 = vld [vmem:[%s855_s4] ss:$0 sm:$0xff]  ;;  %s786_s4 = smov [#allocation10]  }
  0x42   :  { %150 = vmatprep.subr.bf16.mxu0 %v631_v11  ;;  %564 = vmatpush3.bf16.msra.mxu1 %v639_v17  ;;  %v549_v62 = vld [vmem:[%s857_s6] ss:$0 sm:$0xff]  ;;  %s504_s27 = sshll.u32 %s786_s4, 4  ;;  %s505_s27 = int_to_ptr.vmem [resolvable:$true] %s504_s27 }
  0x43   :  { %565 = vmatprep.subr.bf16.mxu1 %v640_v18  ;;  %s746_s28 = scalar_lea.vmem %s505_s27, 16  ;;  %s750_s29 = scalar_lea.vmem %s505_s27, 32 }
  0x44   :  { %p747_p6 = scmp.ne.s32.totalorder %s505_s27, %s746_s28  ;;  %p751_p7 = scmp.lt.s32.totalorder %s505_s27, %s505_s27 }
  0x45   :  { %151 = vmatpush1.bf16.msra.mxu0 %v633_v15  ;;  %p752_p8 = scmp.lt.s32.totalorder %s750_s29, %s746_s28 }
  0x46   :  { %566 = vmatpush3.bf16.msra.mxu1 %v641_v20  ;;  %590 = vmatprep.subr.bf16.mxu0 %v784_v42 }
  0x47   :  { %567 = vmatprep.subr.bf16.mxu1 %v642_v21  ;;  %p753_p9 = por %p752_p8, %p751_p7 }
  0x48   :  { %524 = vmatmul.mubr.msk.bf16.vlgmr.msra.gmra.mxu0 %vm125_vm1, %v82_v19 }
  0x49   :  { %591 = vmatpush3.bf16.msra.mxu0 %v650_v41  ;;  %606 = vmatprep.mubr.msk.bf16.mxu0 %vm785_vm6, %v784_v42  ;;  %p754_p10 = pnand %p753_p9, %p747_p6 }
  0x4a   :  { %568 = vmatpush3.bf16.msra.mxu1 %v643_v22  ;;  %592 = vmatprep.subr.bf16.mxu0 %v784_v42 }
  0x4b   :  { %569 = vmatprep.subr.bf16.mxu1 %v644_v23 }
  0x4d   :  { %593 = vmatpush3.bf16.msra.mxu0 %v651_v43 }
  0x4e   :  { %570 = vmatpush3.bf16.msra.mxu1 %v645_v24  ;;  %594 = vmatprep.subr.bf16.mxu0 %v784_v42 }
  0x4f   :  { %571 = vmatprep.subr.bf16.mxu1 %v646_v25 }
  0x51   :  { %595 = vmatpush3.bf16.msra.mxu0 %v652_v44 }
  0x52   :  { %572 = vmatpush3.bf16.msra.mxu1 %v647_v26  ;;  %596 = vmatprep.subr.bf16.mxu0 %v784_v42 }
  0x53   :  { %573 = vmatprep.subr.bf16.mxu1 %v648_v27 }
  0x55   :  { %597 = vmatpush3.bf16.msra.mxu0 %v653_v45 }
  0x56   :  { %574 = vmatpush3.bf16.msra.mxu1 %v649_v28  ;;  %598 = vmatprep.subr.bf16.mxu0 %v784_v42 }
  0x59   :  { %599 = vmatpush3.bf16.msra.mxu0 %v654_v46 }
  0x5a   :  { %600 = vmatprep.subr.bf16.mxu0 %v784_v42 }
  0x5d   :  { %601 = vmatpush3.bf16.msra.mxu0 %v655_v47 }
  0x5e   :  { %602 = vmatprep.subr.bf16.mxu0 %v784_v42 }
  0x61   :  { %603 = vmatpush3.bf16.msra.mxu0 %v656_v48 }
  0x62   :  { %604 = vmatprep.subr.bf16.mxu0 %v784_v42 }
  0x65   :  { %605 = vmatpush3.bf16.msra.mxu0 %v657_v49 }
 0x108   :  { %v170_v36 = vpop.f32.mrf.mxu0 }
 0x109   :  { %vm189_vm2 = vcmp.eq.f32.partialorder %v170_v36, %v182_v34 }
 0x10a   :  { %v172_v37 = vpop.f32.mrf.mxu0  ;;  %vm546_vm5 = vmpackc.low %vm189_vm2, %vm189_vm2 }
 0x10b   :  { %vm190_vm3 = vcmp.eq.f32.partialorder %v172_v37, %v186_v35 }
 0x10c   :  { %v174_v38 = vpop.f32.mrf.mxu0  ;;  %vm544_vm4 = vmpackc.low %vm190_vm3, %vm190_vm3 }
 0x10d   :  { %545 = vmatprep.mubr.msk.bf16.mxu1 %vm544_vm4, %v783_v39 }
 0x10e   :  { %v175_v40 = vpop.f32.mrf.mxu0  ;;  %547 = vmatmul.mubr.msk.bf16.vlgmr.msra.gmra.mxu1 %vm546_vm5, %v783_v39 }
 0x1ce   :  { %v575_v50 = vpop.f32.mrf.mxu1 }
 0x1d0   :  { %v576_v52 = vpop.f32.mrf.mxu1 }
 0x1d1   :  { %v577_v53 = vadd.f32 %v576_v52, %v575_v50 }
 0x1d2   :  { %v578_v54 = vpop.f32.mrf.mxu1 }
 0x1d3   :  { %v367_v55 = vadd.f32 %v577_v53, %v527_v51 }
 0x1d4   :  { %v579_v56 = vpop.f32.mrf.mxu1 }
 0x1d5   :  { %v548_v57 = vmul.f32 -1.442695, %v367_v55 }
 0x1d7   :  { %658 = vpow2.f32 %v548_v57 }
 0x1e4   :  { %v659_v58 = vpop.eup %658 }
 0x1e5   :  { %v375_v59 = vadd.f32 1.0, %v659_v58 }
 0x1e7   :  { %660 = vrcp.f32 %v375_v59 }
 0x1f4   :  { %v661_v60 = vpop.eup %660 }
 0x1f5   :  { %v378_v61 = vpack.c.bf16 %v661_v60, %v661_v60 }
 0x1f7   :  { %607 = vmatmul.mubr.bf16.vlgmr.msra.gmra.mxu0 %v378_v61 }
 0x2b7   :  { %v484_v63 = vpop.f32.mrf.mxu0 }
 0x2b8   :  { %v485_v0 = vadd.f32 %v549_v62, %v484_v63 }
 0x2b9   :  { %v608_v1 = vpop.f32.mrf.mxu0 }
 0x2ba   :  { %v558_v2 = vmul.f32 -1.442695, %v485_v0 }
 0x2bb   :  { %v487_v3 = vpop.f32.mrf.mxu0 }
 0x2bc   :  { %662 = vpow2.f32 %v558_v2 }
 0x2bd   :  { %v609_v4 = vpop.f32.mrf.mxu0 }
 0x2c9   :  { %v663_v5 = vpop.eup %662 }
 0x2ca   :  { %v493_v6 = vadd.f32 1.0, %v663_v5 }
 0x2cc   :  { %664 = vrcp.f32 %v493_v6 }
 0x2d9   :  { %v665_v7 = vpop.eup %664 }
 0x2da   :  { %v496_v8 = vpack.c.bf16 %v665_v7, %v665_v7 }
 0x2dc   :  { %497 = vst [vmem:[#allocation10] sm:$0x1] %v496_v8 }
 0x2dd   :  { %757 = shalt.err (!%p754_p10)
}
 0x2de   :  { %507 = dma.vmem_to_hbm [thread:$0]  %s505_s27, 16, %s858_s7, [#allocation4]  }
 0x2df   :  { %772 = dma.done.wait [#allocation4], 16  }
 0x2e0   :  { %773 = vsyncadd [#allocation4], 4294967280 }
 0x2e1   :  { %511 = vsyncpa [#allocation3], 1 }
 0x2e2   :  { %512 = vsyncpa [#allocation6], 1 }
 0x2e3   :  { %513 = vsyncpa [#allocation9], 1 }
 0x2e4   :  { %514 = vsyncpa [#allocation4], 1 }

</bundles_post_ra>
